<compile_context>
chip_gen: v5e
topology: v5e:2x2
jax: 0.10.0
libtpu: 0.0.40
codegen_flags: <defaults>
</compile_context>

<pallas_src>
import functools
import math

import jax
import jax.numpy as jnp
from jax.experimental import pallas as pl
from jax.experimental.pallas import tpu as pltpu


def _round_up(x: int, m: int) -> int:
    return ((x + m - 1) // m) * m


def _vmem_capacity_bytes() -> int:
    try:
        info = pltpu.get_tpu_info()
        cap = int(getattr(info, "vmem_capacity_bytes", 0) or 0)
        if cap > 0:
            return cap
    except Exception:
        pass
    return 64 * 1024 * 1024          # conservative (v7x-sized) fallback


def _tile_vmem_bytes(tb, tc, d_pad, cbytes, with_logits):
    """Rough per-call VMEM budget for a (tb, tc) tiling (double-buffered streams)."""
    b = 2 * tb * d_pad * 4           # x block (f32, double-buffered)
    b += tb * d_pad * cbytes         # x cast to compute dtype (scratch)
    b += 2 * tc * d_pad * cbytes     # class-weight tile (double-buffered)
    if with_logits:
        b += 2 * tb * tc * 4         # logits output tile (double-buffered)
    b += 4 * tb * tc * 4             # in-flight (tb, tc) f32 temporaries
    b += 16 * tb * 4                 # (tb, 1) scratches / per-row outputs
    b += 512 * 1024                  # slack (labels, semaphores, ...)
    return b


def _arcface_kernel(x_ref, w_ref, label_ref, *refs, scale, cos_m, sin_m,
                    thresh, mm, easy_margin, n_valid_c, tc, return_logits,
                    mask_cols):
    n_out = 4 if return_logits else 3
    if return_logits:
        logits_ref, ce_ref, hit_ref, tcos_ref = refs[:n_out]
    else:
        logits_ref = None
        ce_ref, hit_ref, tcos_ref = refs[:n_out]
    (xc_sc, ixn_sc, m_sc, l_sc, t_sc, c_sc, bv_sc, bi_sc) = refs[n_out:]

    j = pl.program_id(1)                       # class-tile index (reduction axis)

    # ---- per-batch-tile init at the first class tile -------------------------
    @pl.when(j == 0)
    def _init():
        x = x_ref[...].astype(jnp.float32)
        ixn_sc[...] = jax.lax.rsqrt(
            jnp.maximum(jnp.sum(x * x, axis=-1, keepdims=True), 1e-12))
        xc_sc[...] = x_ref[...].astype(xc_sc.dtype)       # MXU operand (bf16) cast once
        m_sc[...] = jnp.full(m_sc.shape, -jnp.inf, m_sc.dtype)
        l_sc[...] = jnp.zeros(l_sc.shape, l_sc.dtype)
        t_sc[...] = jnp.zeros(t_sc.shape, t_sc.dtype)
        c_sc[...] = jnp.zeros(c_sc.shape, c_sc.dtype)
        bv_sc[...] = jnp.full(bv_sc.shape, -jnp.inf, bv_sc.dtype)
        bi_sc[...] = jnp.zeros(bi_sc.shape, bi_sc.dtype)

    # ---- this class tile: inverse row norms of W (post-matmul scaling) --------
    w = w_ref[...]                                                    # (TC, D) bf16
    inv_wn = jax.lax.rsqrt(jnp.maximum(
        jnp.sum(jnp.square(w.astype(jnp.float32)), axis=-1), 1e-12))  # (TC,)

    # cosine similarity: bf16 operands, f32 accumulation on the MXU
    raw = jax.lax.dot_general(
        xc_sc[...], w,
        dimension_numbers=(((1,), (1,)), ((), ())),
        preferred_element_type=jnp.float32)                            # (TB, TC)
    cos = raw * ixn_sc[...] * inv_wn

    # cos(theta + m) without acos/cos: cos*cos_m - sin(theta)*sin_m
    sin = jnp.sqrt(jnp.clip(1.0 - cos * cos, 0.0, 1.0))
    phi = cos * cos_m - sin * sin_m
    if easy_margin == -1:                 # unconditional margin on the target
        tgt = phi
    elif easy_margin is True:             # margin only if cos > 0
        tgt = jnp.where(cos > 0.0, phi, cos)
    else:                                 # standard ArcFace fallback branch
        tgt = jnp.where(cos > thresh, phi, cos - mm)

    # one-hot of the label restricted to this class tile ((1,TC) iota, broadcast)
    col = j * tc + jax.lax.broadcasted_iota(jnp.int32, (1, tc), 1)     # (1, TC)
    onehot = col == label_ref[...]                                     # (TB, TC)

    out = scale * jnp.where(onehot, tgt, cos)
    if mask_cols:   # padded classes exist only in the last tile; emitted only if any padding
        out = jnp.where(col < n_valid_c, out, -1e30)

    if return_logits:
        logits_ref[...] = out

    # ---- online cross-entropy (logsumexp + target logit / target cosine) ------
    m_prev = m_sc[...]
    tile_max = jnp.max(out, axis=-1, keepdims=True)
    m_new = jnp.maximum(m_prev, tile_max)
    l_sc[...] = l_sc[...] * jnp.exp(m_prev - m_new) + jnp.sum(
        jnp.exp(out - m_new), axis=-1, keepdims=True)
    m_sc[...] = m_new
    t_sc[...] = t_sc[...] + jnp.sum(jnp.where(onehot, out, 0.0), axis=-1, keepdims=True)
    c_sc[...] = c_sc[...] + jnp.sum(jnp.where(onehot, cos, 0.0), axis=-1, keepdims=True)

    # ---- fused running top-1 (first-occurrence argmax across class tiles) -----
    tile_arg = jnp.min(jnp.where(out == tile_max, col, jnp.int32(2 ** 30)),
                       axis=-1, keepdims=True)
    better = tile_max > bv_sc[...]
    bv_sc[...] = jnp.where(better, tile_max, bv_sc[...])
    bi_sc[...] = jnp.where(better, tile_arg, bi_sc[...])

    # ---- finalize on the last class tile: per-row CE / hit flag / target cos --
    @pl.when(j == pl.num_programs(1) - 1)
    def _finalize():
        ce_ref[...] = m_sc[...] + jnp.log(l_sc[...]) - t_sc[...]
        hit_ref[...] = (bi_sc[...] == label_ref[...]).astype(jnp.float32)
        tcos_ref[...] = c_sc[...]


def arcface_loss(x, weight, label, *, scale=30.0, margin=0.5, easy_margin=-1,
                 return_logits=True, with_theta=False,
                 compute_dtype=jnp.bfloat16):
    """Forward pass of ArcFaceLoss. Returns {'loss','top1'[,'logits'][,'thetas']}."""
    B, D = x.shape
    C, D2 = weight.shape
    assert D == D2, "feature dims of input and classifier must match"

    x = x.astype(jnp.float32)
    label = label.astype(jnp.int32)
    w_c = weight.astype(compute_dtype)        # stream W in the narrow compute dtype
    cbytes = jnp.dtype(compute_dtype).itemsize

    # ---- generation-aware tiling (VMEM-budgeted) -----------------------------
    D_pad = _round_up(D, 128)
    TB = min(_round_up(B, 8), 256)
    B_pad = _round_up(B, TB)
    C128 = _round_up(C, 128)

    vmem_cap = _vmem_capacity_bytes()
    vmem_budget = (vmem_cap * 3) // 4         # leave headroom below physical VMEM

    TC = 128
    for cand in sorted({min(c, C128) for c in (2048, 1024, 512, 256, 128)},
                       reverse=True):
        if _tile_vmem_bytes(TB, cand, D_pad, cbytes, return_logits) > vmem_budget:
            continue
        if 4 * (_round_up(C128, cand) - C128) > C128:   # avoid >25% padded classes
            continue
        TC = cand
        break
    C_pad = _round_up(C128, TC)

    # conditional padding (fused by XLA with the astype -> one copy of W at most)
    x_p = x if (B_pad == B and D_pad == D) else jnp.pad(
        x, ((0, B_pad - B), (0, D_pad - D)))
    w_p = w_c if (C_pad == C and D_pad == D) else jnp.pad(
        w_c, ((0, C_pad - C), (0, D_pad - D)))
    lbl = label if B_pad == B else jnp.pad(label, (0, B_pad - B))
    lbl2d = lbl.reshape(B_pad, 1)

    nb, nc = B_pad // TB, C_pad // TC

    kernel = functools.partial(
        _arcface_kernel,
        scale=float(scale),
        cos_m=math.cos(margin),
        sin_m=math.sin(margin),
        thresh=math.cos(math.pi - margin),
        mm=math.sin(math.pi - margin) * margin,
        easy_margin=easy_margin,
        n_valid_c=C,
        tc=TC,
        return_logits=return_logits,
        mask_cols=(C_pad != C))

    out_shapes, out_specs = [], []
    if return_logits:
        out_shapes.append(jax.ShapeDtypeStruct((B_pad, C_pad), jnp.float32))
        out_specs.append(pl.BlockSpec((TB, TC), lambda i, j: (i, j)))
    for _ in range(3):   # per-row CE, top-1 hit flag, target cosine
        out_shapes.append(jax.ShapeDtypeStruct((B_pad, 1), jnp.float32))
        out_specs.append(pl.BlockSpec((TB, 1), lambda i, j: (i, 0)))

    outs = pl.pallas_call(
        kernel,
        out_shape=tuple(out_shapes),
        grid_spec=pltpu.PrefetchScalarGridSpec(
            num_scalar_prefetch=0,
            grid=(nb, nc),
            in_specs=[
                pl.BlockSpec((TB, D_pad), lambda i, j: (i, 0)),   # embeddings (f32)
                pl.BlockSpec((TC, D_pad), lambda i, j: (j, 0)),   # class-weight tile (bf16)
                pl.BlockSpec((TB, 1), lambda i, j: (i, 0)),       # labels
            ],
            out_specs=out_specs,
            scratch_shapes=[
                pltpu.VMEM((TB, D_pad), compute_dtype),   # x in compute dtype
                pltpu.VMEM((TB, 1), jnp.float32),          # 1/||x||
                pltpu.VMEM((TB, 1), jnp.float32),          # running max
                pltpu.VMEM((TB, 1), jnp.float32),          # running sum-exp
                pltpu.VMEM((TB, 1), jnp.float32),          # target logit
                pltpu.VMEM((TB, 1), jnp.float32),          # target cosine
                pltpu.VMEM((TB, 1), jnp.float32),          # best logit (top-1)
                pltpu.VMEM((TB, 1), jnp.int32),            # best class index (top-1)
            ]),
        compiler_params=pltpu.CompilerParams(
            dimension_semantics=("parallel", "arbitrary"),
            vmem_limit_bytes=int(vmem_budget)),
    )(x_p, w_p, lbl2d)

    if return_logits:
        logits_pad, ce_rows, hit_rows, tcos_rows = outs
        logits = logits_pad if (B_pad == B and C_pad == C) else logits_pad[:B, :C]
    else:
        ce_rows, hit_rows, tcos_rows = outs
        logits = None

    result = {
        "loss": jnp.mean(ce_rows[:B, 0]),
        "top1": jnp.mean(hit_rows[:B, 0]) * 100.0,
    }
    if return_logits:
        result["logits"] = logits
    if with_theta:
        tcos = jnp.clip(tcos_rows[:B, 0], -1.0, 1.0)
        result["thetas"] = jnp.arccos(tcos) / math.pi * 180.0
    return result


def _arcface_ref(x, w, label, scale, margin, easy_margin,
                 compute_dtype=jnp.float32):
    """Pure-JAX reference matching the PyTorch module (compute_dtype mimics the MXU path)."""
    xc = x.astype(compute_dtype).astype(jnp.float32)
    wc = w.astype(compute_dtype).astype(jnp.float32)
    inv_xn = jax.lax.rsqrt(jnp.maximum(
        jnp.sum(x.astype(jnp.float32) ** 2, axis=1, keepdims=True), 1e-12))
    inv_wn = jax.lax.rsqrt(jnp.maximum(jnp.sum(wc ** 2, axis=1, keepdims=True), 1e-12))
    cos = jnp.dot(xc, wc.T, precision=jax.lax.Precision.HIGHEST) * inv_xn * inv_wn.T
    sin = jnp.sqrt(jnp.clip(1.0 - cos * cos, 0.0, 1.0))
    phi = cos * math.cos(margin) - sin * math.sin(margin)
    if easy_margin == -1:
        tgt = phi
    elif easy_margin is True:
        tgt = jnp.where(cos > 0.0, phi, cos)
    else:
        thr = math.cos(math.pi - margin)
        mm = math.sin(math.pi - margin) * margin
        tgt = jnp.where(cos > thr, phi, cos - mm)
    onehot = jax.nn.one_hot(label, w.shape[0], dtype=jnp.bool_)
    logits = scale * jnp.where(onehot, tgt, cos)
    logp = jax.nn.log_softmax(logits, axis=-1)
    loss = -jnp.mean(jnp.take_along_axis(logp, label[:, None], axis=1))
    tcos = jnp.take_along_axis(cos, label[:, None], axis=1)[:, 0]
    thetas = jnp.arccos(jnp.clip(tcos, -1.0, 1.0)) / math.pi * 180.0
    return logits, loss, thetas


if __name__ == "__main__":
    key = jax.random.PRNGKey(0)
    B, D, C = 8, 32, 16            # batch, in_features, out_features
    scale, margin = 30.0, 0.5

    kx, kw, kl = jax.random.split(key, 3)
    x = jax.random.normal(kx, (B, D), dtype=jnp.float32)
    w = jax.random.normal(kw, (C, D), dtype=jnp.float32) * 0.001   # fc_std init
    label = jax.random.randint(kl, (B,), 0, C, dtype=jnp.int32)

    ok = True
    for em in (-1, False, True):   # all three easy_margin branches
        out = arcface_loss(x, w, label, scale=scale, margin=margin,
                           easy_margin=em, return_logits=True, with_theta=True)
        jax.block_until_ready(out["loss"])

        # tight check vs a reference using the same bf16-rounded MXU operands
        ref_logits, ref_loss, ref_thetas = _arcface_ref(
            x, w, label, scale, margin, em, compute_dtype=jnp.bfloat16)
        ok &= bool(jnp.all(jnp.isfinite(out["logits"])))
        ok &= bool(jnp.isfinite(out["loss"]))
        ok &= bool(jnp.allclose(out["logits"], ref_logits, atol=2e-3, rtol=2e-3))
        ok &= bool(jnp.allclose(out["loss"], ref_loss, atol=2e-3, rtol=2e-3))
        ok &= bool(jnp.allclose(out["thetas"], ref_thetas, atol=1e-2))

        # loose sanity check vs the full-f32 reference (bf16 MXU rounding, scale=30)
        f32_logits, f32_loss, _ = _arcface_ref(x, w, label, scale, margin, em)
        ok &= bool(jnp.allclose(out["logits"], f32_logits, atol=0.5, rtol=0.05))
        ok &= bool(jnp.allclose(out["loss"], f32_loss, atol=0.25))

        # fused top-1 consistent with argmax over the returned logits
        top1_ref = jnp.mean(
            (jnp.argmax(out["logits"], axis=1) == label).astype(jnp.float32)) * 100.0
        ok &= bool(jnp.allclose(out["top1"], top1_ref))

    # exercise the loss/top-1-only path (no B x C logits write-back)
    out_full = arcface_loss(x, w, label, scale=scale, margin=margin, easy_margin=-1)
    out_lite = arcface_loss(x, w, label, scale=scale, margin=margin, easy_margin=-1,
                            return_logits=False)
    jax.block_until_ready(out_lite["loss"])
    ok &= ("logits" not in out_lite)
    ok &= bool(jnp.allclose(out_lite["loss"], out_full["loss"], atol=1e-5))
    ok &= bool(jnp.allclose(out_lite["top1"], out_full["top1"]))

    assert ok, "Pallas ArcFace output does not match the JAX reference"
    print("KERNEL_OK")
</pallas_src>

<mosaic_0001>
module attributes {stable_mosaic.version = 11 : i64} {
  func.func @_arcface_kernel(%arg0: i32, %arg1: i32, %arg2: memref<8x128xf32, #tpu.memory_space<vmem>>, %arg3: memref<128x128xbf16, #tpu.memory_space<vmem>>, %arg4: memref<8x1xi32, #tpu.memory_space<vmem>>, %arg5: memref<8x128xf32, #tpu.memory_space<vmem>>, %arg6: memref<8x1xf32, #tpu.memory_space<vmem>>, %arg7: memref<8x1xf32, #tpu.memory_space<vmem>>, %arg8: memref<8x1xf32, #tpu.memory_space<vmem>>, %arg9: memref<8x128xbf16, #tpu.memory_space<vmem>>, %arg10: memref<8x1xf32, #tpu.memory_space<vmem>>, %arg11: memref<8x1xf32, #tpu.memory_space<vmem>>, %arg12: memref<8x1xf32, #tpu.memory_space<vmem>>, %arg13: memref<8x1xf32, #tpu.memory_space<vmem>>, %arg14: memref<8x1xf32, #tpu.memory_space<vmem>>, %arg15: memref<8x1xf32, #tpu.memory_space<vmem>>, %arg16: memref<8x1xi32, #tpu.memory_space<vmem>>) attributes {dimension_semantics = [#tpu.dimension_semantics<parallel>, #tpu.dimension_semantics<arbitrary>], iteration_bounds = array<i64: 1, 1>, scalar_prefetch = 0 : i64, scratch_operands = 8 : i64, tpu.core_type = #tpu.core_type<tc>, window_params = [{transform_indices = @transform_0, window_bounds = array<i64: 8, 128>}, {transform_indices = @transform_1, window_bounds = array<i64: 128, 128>}, {transform_indices = @transform_2, window_bounds = array<i64: 8, 1>}, {transform_indices = @transform_3, window_bounds = array<i64: 8, 128>}, {transform_indices = @transform_4, window_bounds = array<i64: 8, 1>}, {transform_indices = @transform_5, window_bounds = array<i64: 8, 1>}, {transform_indices = @transform_6, window_bounds = array<i64: 8, 1>}]} {
    %c0_i32 = arith.constant 0 : i32
    %0 = arith.cmpi eq, %arg1, %c0_i32 : i32
    %1 = arith.extui %0 : i1 to i32
    %c0_i32_0 = arith.constant 0 : i32
    %2 = arith.cmpi ne, %1, %c0_i32_0 : i32
    scf.if %2 {
      %c0_54 = arith.constant 0 : index
      %c0_55 = arith.constant 0 : index
      %98 = vector.load %arg2[%c0_54, %c0_55] : memref<8x128xf32, #tpu.memory_space<vmem>>, vector<8x128xf32>
      %99 = arith.mulf %98, %98 : vector<8x128xf32>
      %cst_56 = arith.constant dense<0.000000e+00> : vector<8xf32>
      %100 = vector.multi_reduction <add>, %99, %cst_56 [1] : vector<8x128xf32> to vector<8xf32>
      %101 = vector.shape_cast %100 : vector<8xf32> to vector<8x1xf32>
      %cst_57 = arith.constant 9.99999996E-13 : f32
      %102 = vector.broadcast %cst_57 : f32 to vector<8x1xf32>
      %103 = arith.maximumf %101, %102 : vector<8x1xf32>
      %104 = math.rsqrt %103 : vector<8x1xf32>
      %c0_58 = arith.constant 0 : index
      %c0_59 = arith.constant 0 : index
      %105 = vector.load %arg10[%c0_58, %c0_59] : memref<8x1xf32, #tpu.memory_space<vmem>>, vector<8x1xf32>
      tpu.vector_store %arg10[%c0_58, %c0_59], %104 {strides = array<i32>} : memref<8x1xf32, #tpu.memory_space<vmem>>, vector<8x1xf32>,
      %c0_60 = arith.constant 0 : index
      %c0_61 = arith.constant 0 : index
      %106 = vector.load %arg2[%c0_60, %c0_61] : memref<8x128xf32, #tpu.memory_space<vmem>>, vector<8x128xf32>
      %107 = arith.truncf %106 : vector<8x128xf32> to vector<8x128xbf16>
      %c0_62 = arith.constant 0 : index
      %c0_63 = arith.constant 0 : index
      %108 = vector.load %arg9[%c0_62, %c0_63] : memref<8x128xbf16, #tpu.memory_space<vmem>>, vector<8x128xbf16>
      tpu.vector_store %arg9[%c0_62, %c0_63], %107 {strides = array<i32>} : memref<8x128xbf16, #tpu.memory_space<vmem>>, vector<8x128xbf16>,
      %cst_64 = arith.constant 0xFF800000 : f32
      %109 = vector.broadcast %cst_64 : f32 to vector<8x1xf32>
      %c0_65 = arith.constant 0 : index
      %c0_66 = arith.constant 0 : index
      %110 = vector.load %arg11[%c0_65, %c0_66] : memref<8x1xf32, #tpu.memory_space<vmem>>, vector<8x1xf32>
      tpu.vector_store %arg11[%c0_65, %c0_66], %109 {strides = array<i32>} : memref<8x1xf32, #tpu.memory_space<vmem>>, vector<8x1xf32>,
      %cst_67 = arith.constant 0.000000e+00 : f32
      %111 = vector.broadcast %cst_67 : f32 to vector<8x1xf32>
      %c0_68 = arith.constant 0 : index
      %c0_69 = arith.constant 0 : index
      %112 = vector.load %arg12[%c0_68, %c0_69] : memref<8x1xf32, #tpu.memory_space<vmem>>, vector<8x1xf32>
      tpu.vector_store %arg12[%c0_68, %c0_69], %111 {strides = array<i32>} : memref<8x1xf32, #tpu.memory_space<vmem>>, vector<8x1xf32>,
      %cst_70 = arith.constant 0.000000e+00 : f32
      %113 = vector.broadcast %cst_70 : f32 to vector<8x1xf32>
      %c0_71 = arith.constant 0 : index
      %c0_72 = arith.constant 0 : index
      %114 = vector.load %arg13[%c0_71, %c0_72] : memref<8x1xf32, #tpu.memory_space<vmem>>, vector<8x1xf32>
      tpu.vector_store %arg13[%c0_71, %c0_72], %113 {strides = array<i32>} : memref<8x1xf32, #tpu.memory_space<vmem>>, vector<8x1xf32>,
      %cst_73 = arith.constant 0.000000e+00 : f32
      %115 = vector.broadcast %cst_73 : f32 to vector<8x1xf32>
      %c0_74 = arith.constant 0 : index
      %c0_75 = arith.constant 0 : index
      %116 = vector.load %arg14[%c0_74, %c0_75] : memref<8x1xf32, #tpu.memory_space<vmem>>, vector<8x1xf32>
      tpu.vector_store %arg14[%c0_74, %c0_75], %115 {strides = array<i32>} : memref<8x1xf32, #tpu.memory_space<vmem>>, vector<8x1xf32>,
      %cst_76 = arith.constant 0xFF800000 : f32
      %117 = vector.broadcast %cst_76 : f32 to vector<8x1xf32>
      %c0_77 = arith.constant 0 : index
      %c0_78 = arith.constant 0 : index
      %118 = vector.load %arg15[%c0_77, %c0_78] : memref<8x1xf32, #tpu.memory_space<vmem>>, vector<8x1xf32>
      tpu.vector_store %arg15[%c0_77, %c0_78], %117 {strides = array<i32>} : memref<8x1xf32, #tpu.memory_space<vmem>>, vector<8x1xf32>,
      %c0_i32_79 = arith.constant 0 : i32
      %119 = vector.broadcast %c0_i32_79 : i32 to vector<8x1xi32>
      %c0_80 = arith.constant 0 : index
      %c0_81 = arith.constant 0 : index
      %120 = vector.load %arg16[%c0_80, %c0_81] : memref<8x1xi32, #tpu.memory_space<vmem>>, vector<8x1xi32>
      tpu.vector_store %arg16[%c0_80, %c0_81], %119 {strides = array<i32>} : memref<8x1xi32, #tpu.memory_space<vmem>>, vector<8x1xi32>,
    } else {
    }
    %c0 = arith.constant 0 : index
    %c0_1 = arith.constant 0 : index
    %3 = vector.load %arg3[%c0, %c0_1] : memref<128x128xbf16, #tpu.memory_space<vmem>>, vector<128x128xbf16>
    %4 = arith.extf %3 : vector<128x128xbf16> to vector<128x128xf32>
    %5 = arith.mulf %4, %4 : vector<128x128xf32>
    %cst = arith.constant dense<0.000000e+00> : vector<128xf32>
    %6 = vector.multi_reduction <add>, %5, %cst [1] : vector<128x128xf32> to vector<128xf32>
    %cst_2 = arith.constant 9.99999996E-13 : f32
    %7 = vector.broadcast %cst_2 : f32 to vector<128xf32>
    %8 = arith.maximumf %6, %7 : vector<128xf32>
    %9 = math.rsqrt %8 : vector<128xf32>
    %c0_3 = arith.constant 0 : index
    %c0_4 = arith.constant 0 : index
    %10 = vector.load %arg9[%c0_3, %c0_4] : memref<8x128xbf16, #tpu.memory_space<vmem>>, vector<8x128xbf16>
    %cst_5 = arith.constant dense<0.000000e+00> : vector<8x128xf32>
    %11 = tpu.matmul %10, %3, %cst_5 {dimension_numbers = #tpu.dot_dimension_numbers<[1], [1], [0], [0], [0, 0, 1, 0], [], []>} : vector<8x128xbf16>, vector<128x128xbf16>, vector<8x128xf32> -> vector<8x128xf32>
    %c0_6 = arith.constant 0 : index
    %c0_7 = arith.constant 0 : index
    %12 = vector.load %arg10[%c0_6, %c0_7] : memref<8x1xf32, #tpu.memory_space<vmem>>, vector<8x1xf32>
    %13 = vector.broadcast %12 : vector<8x1xf32> to vector<8x128xf32>
    %14 = arith.mulf %11, %13 : vector<8x128xf32>
    %15 = vector.shape_cast %9 : vector<128xf32> to vector<1x128xf32>
    %16 = vector.broadcast %15 : vector<1x128xf32> to vector<8x128xf32>
    %17 = arith.mulf %14, %16 : vector<8x128xf32>
    %18 = arith.mulf %17, %17 : vector<8x128xf32>
    %cst_8 = arith.constant 1.000000e+00 : f32
    %19 = vector.broadcast %cst_8 : f32 to vector<8x128xf32>
    %20 = arith.subf %19, %18 : vector<8x128xf32>
    %cst_9 = arith.constant 0.000000e+00 : f32
    %cst_10 = arith.constant 1.000000e+00 : f32
    %21 = vector.broadcast %cst_9 : f32 to vector<8x128xf32>
    %22 = arith.maximumf %21, %20 : vector<8x128xf32>
    %23 = vector.broadcast %cst_10 : f32 to vector<8x128xf32>
    %24 = arith.minimumf %23, %22 : vector<8x128xf32>
    %25 = math.sqrt %24 : vector<8x128xf32>
    %cst_11 = arith.constant 0.87758255 : f32
    %26 = vector.broadcast %cst_11 : f32 to vector<8x128xf32>
    %27 = arith.mulf %17, %26 : vector<8x128xf32>
    %cst_12 = arith.constant 0.47942555 : f32
    %28 = vector.broadcast %cst_12 : f32 to vector<8x128xf32>
    %29 = arith.mulf %25, %28 : vector<8x128xf32>
    %30 = arith.subf %27, %29 : vector<8x128xf32>
    %c128_i32 = arith.constant 128 : i32
    %31 = arith.muli %arg1, %c128_i32 : i32
    %32 = tpu.iota {dimensions = array<i32: 1>} : vector<1x128xi32>
    %33 = vector.broadcast %31 : i32 to vector<1x128xi32>
    %34 = arith.addi %33, %32 : vector<1x128xi32>
    %c0_13 = arith.constant 0 : index
    %c0_14 = arith.constant 0 : index
    %35 = vector.load %arg4[%c0_13, %c0_14] : memref<8x1xi32, #tpu.memory_space<vmem>>, vector<8x1xi32>
    %36 = vector.broadcast %34 : vector<1x128xi32> to vector<8x128xi32>
    %37 = vector.broadcast %35 : vector<8x1xi32> to vector<8x128xi32>
    %38 = arith.cmpi eq, %36, %37 : vector<8x128xi32>
    %39 = arith.select %38, %30, %17 : vector<8x128xi1>, vector<8x128xf32>
    %cst_15 = arith.constant 3.000000e+01 : f32
    %40 = vector.broadcast %cst_15 : f32 to vector<8x128xf32>
    %41 = arith.mulf %40, %39 : vector<8x128xf32>
    %c16_i32 = arith.constant 16 : i32
    %42 = vector.broadcast %c16_i32 : i32 to vector<1x128xi32>
    %43 = arith.cmpi slt, %34, %42 : vector<1x128xi32>
    %cst_16 = arith.constant -1.000000e+30 : f32
    %44 = vector.shape_cast %43 : vector<1x128xi1> to vector<1x128xi1>
    %45 = vector.broadcast %44 : vector<1x128xi1> to vector<8x128xi1>
    %46 = vector.broadcast %cst_16 : f32 to vector<8x128xf32>
    %47 = arith.select %45, %41, %46 : vector<8x128xi1>, vector<8x128xf32>
    %c0_17 = arith.constant 0 : index
    %c0_18 = arith.constant 0 : index
    %48 = vector.load %arg5[%c0_17, %c0_18] : memref<8x128xf32, #tpu.memory_space<vmem>>, vector<8x128xf32>
    tpu.vector_store %arg5[%c0_17, %c0_18], %47 {strides = array<i32>} : memref<8x128xf32, #tpu.memory_space<vmem>>, vector<8x128xf32>,
    %c0_19 = arith.constant 0 : index
    %c0_20 = arith.constant 0 : index
    %49 = vector.load %arg11[%c0_19, %c0_20] : memref<8x1xf32, #tpu.memory_space<vmem>>, vector<8x1xf32>
    %cst_21 = arith.constant dense<0xFF800000> : vector<8xf32>
    %50 = vector.multi_reduction <maximumf>, %47, %cst_21 [1] : vector<8x128xf32> to vector<8xf32>
    %51 = vector.shape_cast %50 : vector<8xf32> to vector<8x1xf32>
    %52 = arith.maximumf %49, %51 : vector<8x1xf32>
    %c0_22 = arith.constant 0 : index
    %c0_23 = arith.constant 0 : index
    %53 = vector.load %arg12[%c0_22, %c0_23] : memref<8x1xf32, #tpu.memory_space<vmem>>, vector<8x1xf32>
    %54 = arith.subf %49, %52 : vector<8x1xf32>
    %55 = math.exp %54 : vector<8x1xf32>
    %56 = arith.mulf %53, %55 : vector<8x1xf32>
    %57 = vector.broadcast %52 : vector<8x1xf32> to vector<8x128xf32>
    %58 = arith.subf %47, %57 : vector<8x128xf32>
    %59 = math.exp %58 : vector<8x128xf32>
    %cst_24 = arith.constant dense<0.000000e+00> : vector<8xf32>
    %60 = vector.multi_reduction <add>, %59, %cst_24 [1] : vector<8x128xf32> to vector<8xf32>
    %61 = vector.shape_cast %60 : vector<8xf32> to vector<8x1xf32>
    %62 = arith.addf %56, %61 : vector<8x1xf32>
    %c0_25 = arith.constant 0 : index
    %c0_26 = arith.constant 0 : index
    %63 = vector.load %arg12[%c0_25, %c0_26] : memref<8x1xf32, #tpu.memory_space<vmem>>, vector<8x1xf32>
    tpu.vector_store %arg12[%c0_25, %c0_26], %62 {strides = array<i32>} : memref<8x1xf32, #tpu.memory_space<vmem>>, vector<8x1xf32>,
    %c0_27 = arith.constant 0 : index
    %c0_28 = arith.constant 0 : index
    %64 = vector.load %arg11[%c0_27, %c0_28] : memref<8x1xf32, #tpu.memory_space<vmem>>, vector<8x1xf32>
    tpu.vector_store %arg11[%c0_27, %c0_28], %52 {strides = array<i32>} : memref<8x1xf32, #tpu.memory_space<vmem>>, vector<8x1xf32>,
    %c0_29 = arith.constant 0 : index
    %c0_30 = arith.constant 0 : index
    %65 = vector.load %arg13[%c0_29, %c0_30] : memref<8x1xf32, #tpu.memory_space<vmem>>, vector<8x1xf32>
    %cst_31 = arith.constant 0.000000e+00 : f32
    %66 = vector.broadcast %cst_31 : f32 to vector<8x128xf32>
    %67 = arith.select %38, %47, %66 : vector<8x128xi1>, vector<8x128xf32>
    %cst_32 = arith.constant dense<0.000000e+00> : vector<8xf32>
    %68 = vector.multi_reduction <add>, %67, %cst_32 [1] : vector<8x128xf32> to vector<8xf32>
    %69 = vector.shape_cast %68 : vector<8xf32> to vector<8x1xf32>
    %70 = arith.addf %65, %69 : vector<8x1xf32>
    %c0_33 = arith.constant 0 : index
    %c0_34 = arith.constant 0 : index
    %71 = vector.load %arg13[%c0_33, %c0_34] : memref<8x1xf32, #tpu.memory_space<vmem>>, vector<8x1xf32>
    tpu.vector_store %arg13[%c0_33, %c0_34], %70 {strides = array<i32>} : memref<8x1xf32, #tpu.memory_space<vmem>>, vector<8x1xf32>,
    %c0_35 = arith.constant 0 : index
    %c0_36 = arith.constant 0 : index
    %72 = vector.load %arg14[%c0_35, %c0_36] : memref<8x1xf32, #tpu.memory_space<vmem>>, vector<8x1xf32>
    %cst_37 = arith.constant 0.000000e+00 : f32
    %73 = vector.broadcast %cst_37 : f32 to vector<8x128xf32>
    %74 = arith.select %38, %17, %73 : vector<8x128xi1>, vector<8x128xf32>
    %cst_38 = arith.constant dense<0.000000e+00> : vector<8xf32>
    %75 = vector.multi_reduction <add>, %74, %cst_38 [1] : vector<8x128xf32> to vector<8xf32>
    %76 = vector.shape_cast %75 : vector<8xf32> to vector<8x1xf32>
    %77 = arith.addf %72, %76 : vector<8x1xf32>
    %c0_39 = arith.constant 0 : index
    %c0_40 = arith.constant 0 : index
    %78 = vector.load %arg14[%c0_39, %c0_40] : memref<8x1xf32, #tpu.memory_space<vmem>>, vector<8x1xf32>
    tpu.vector_store %arg14[%c0_39, %c0_40], %77 {strides = array<i32>} : memref<8x1xf32, #tpu.memory_space<vmem>>, vector<8x1xf32>,
    %79 = vector.broadcast %51 : vector<8x1xf32> to vector<8x128xf32>
    %80 = arith.cmpf oeq, %47, %79 : vector<8x128xf32>
    %c1073741824_i32 = arith.constant 1073741824 : i32
    %81 = vector.shape_cast %34 : vector<1x128xi32> to vector<1x128xi32>
    %82 = vector.broadcast %81 : vector<1x128xi32> to vector<8x128xi32>
    %83 = vector.broadcast %c1073741824_i32 : i32 to vector<8x128xi32>
    %84 = arith.select %80, %82, %83 : vector<8x128xi1>, vector<8x128xi32>
    %cst_41 = arith.constant dense<2147483647> : vector<8xi32>
    %85 = vector.multi_reduction <minsi>, %84, %cst_41 [1] : vector<8x128xi32> to vector<8xi32>
    %86 = vector.shape_cast %85 : vector<8xi32> to vector<8x1xi32>
    %c0_42 = arith.constant 0 : index
    %c0_43 = arith.constant 0 : index
    %87 = vector.load %arg15[%c0_42, %c0_43] : memref<8x1xf32, #tpu.memory_space<vmem>>, vector<8x1xf32>
    %88 = arith.cmpf ogt, %51, %87 : vector<8x1xf32>
    %c0_44 = arith.constant 0 : index
    %c0_45 = arith.constant 0 : index
    %89 = vector.load %arg15[%c0_44, %c0_45] : memref<8x1xf32, #tpu.memory_space<vmem>>, vector<8x1xf32>
    %90 = arith.select %88, %51, %89 : vector<8x1xi1>, vector<8x1xf32>
    %c0_46 = arith.constant 0 : index
    %c0_47 = arith.constant 0 : index
    %91 = vector.load %arg15[%c0_46, %c0_47] : memref<8x1xf32, #tpu.memory_space<vmem>>, vector<8x1xf32>
    tpu.vector_store %arg15[%c0_46, %c0_47], %90 {strides = array<i32>} : memref<8x1xf32, #tpu.memory_space<vmem>>, vector<8x1xf32>,
    %c0_48 = arith.constant 0 : index
    %c0_49 = arith.constant 0 : index
    %92 = vector.load %arg16[%c0_48, %c0_49] : memref<8x1xi32, #tpu.memory_space<vmem>>, vector<8x1xi32>
    %93 = arith.select %88, %86, %92 : vector<8x1xi1>, vector<8x1xi32>
    %c0_50 = arith.constant 0 : index
    %c0_51 = arith.constant 0 : index
    %94 = vector.load %arg16[%c0_50, %c0_51] : memref<8x1xi32, #tpu.memory_space<vmem>>, vector<8x1xi32>
    tpu.vector_store %arg16[%c0_50, %c0_51], %93 {strides = array<i32>} : memref<8x1xi32, #tpu.memory_space<vmem>>, vector<8x1xi32>,
    %c0_i32_52 = arith.constant 0 : i32
    %95 = arith.cmpi eq, %arg1, %c0_i32_52 : i32
    %96 = arith.extui %95 : i1 to i32
    %c0_i32_53 = arith.constant 0 : i32
    %97 = arith.cmpi ne, %96, %c0_i32_53 : i32
    scf.if %97 {
      %c0_54 = arith.constant 0 : index
      %c0_55 = arith.constant 0 : index
      %98 = vector.load %arg11[%c0_54, %c0_55] : memref<8x1xf32, #tpu.memory_space<vmem>>, vector<8x1xf32>
      %c0_56 = arith.constant 0 : index
      %c0_57 = arith.constant 0 : index
      %99 = vector.load %arg12[%c0_56, %c0_57] : memref<8x1xf32, #tpu.memory_space<vmem>>, vector<8x1xf32>
      %100 = math.log %99 : vector<8x1xf32>
      %101 = arith.addf %98, %100 : vector<8x1xf32>
      %c0_58 = arith.constant 0 : index
      %c0_59 = arith.constant 0 : index
      %102 = vector.load %arg13[%c0_58, %c0_59] : memref<8x1xf32, #tpu.memory_space<vmem>>, vector<8x1xf32>
      %103 = arith.subf %101, %102 : vector<8x1xf32>
      %c0_60 = arith.constant 0 : index
      %c0_61 = arith.constant 0 : index
      %104 = vector.load %arg6[%c0_60, %c0_61] : memref<8x1xf32, #tpu.memory_space<vmem>>, vector<8x1xf32>
      tpu.vector_store %arg6[%c0_60, %c0_61], %103 {strides = array<i32>} : memref<8x1xf32, #tpu.memory_space<vmem>>, vector<8x1xf32>,
      %c0_62 = arith.constant 0 : index
      %c0_63 = arith.constant 0 : index
      %105 = vector.load %arg16[%c0_62, %c0_63] : memref<8x1xi32, #tpu.memory_space<vmem>>, vector<8x1xi32>
      %c0_64 = arith.constant 0 : index
      %c0_65 = arith.constant 0 : index
      %106 = vector.load %arg4[%c0_64, %c0_65] : memref<8x1xi32, #tpu.memory_space<vmem>>, vector<8x1xi32>
      %107 = arith.cmpi eq, %105, %106 : vector<8x1xi32>
      %108 = arith.extui %107 : vector<8x1xi1> to vector<8x1xi32>
      %109 = arith.sitofp %108 : vector<8x1xi32> to vector<8x1xf32>
      %c0_66 = arith.constant 0 : index
      %c0_67 = arith.constant 0 : index
      %110 = vector.load %arg7[%c0_66, %c0_67] : memref<8x1xf32, #tpu.memory_space<vmem>>, vector<8x1xf32>
      tpu.vector_store %arg7[%c0_66, %c0_67], %109 {strides = array<i32>} : memref<8x1xf32, #tpu.memory_space<vmem>>, vector<8x1xf32>,
      %c0_68 = arith.constant 0 : index
      %c0_69 = arith.constant 0 : index
      %111 = vector.load %arg14[%c0_68, %c0_69] : memref<8x1xf32, #tpu.memory_space<vmem>>, vector<8x1xf32>
      %c0_70 = arith.constant 0 : index
      %c0_71 = arith.constant 0 : index
      %112 = vector.load %arg8[%c0_70, %c0_71] : memref<8x1xf32, #tpu.memory_space<vmem>>, vector<8x1xf32>
      tpu.vector_store %arg8[%c0_70, %c0_71], %111 {strides = array<i32>} : memref<8x1xf32, #tpu.memory_space<vmem>>, vector<8x1xf32>,
    } else {
    }
    return
  }
  func.func @transform_0(%arg0: i32, %arg1: i32) -> (i32, i32) {
    %c0_i32 = arith.constant 0 : i32
    %c0_i32_0 = arith.constant 0 : i32
    return %arg0, %c0_i32 : i32, i32
  }
  func.func @transform_1(%arg0: i32, %arg1: i32) -> (i32, i32) {
    %c0_i32 = arith.constant 0 : i32
    %c0_i32_0 = arith.constant 0 : i32
    return %arg1, %c0_i32 : i32, i32
  }
  func.func @transform_2(%arg0: i32, %arg1: i32) -> (i32, i32) {
    %c0_i32 = arith.constant 0 : i32
    %c0_i32_0 = arith.constant 0 : i32
    return %arg0, %c0_i32 : i32, i32
  }
  func.func @transform_3(%arg0: i32, %arg1: i32) -> (i32, i32) {
    %c0_i32 = arith.constant 0 : i32
    return %arg0, %arg1 : i32, i32
  }
  func.func @transform_4(%arg0: i32, %arg1: i32) -> (i32, i32) {
    %c0_i32 = arith.constant 0 : i32
    %c0_i32_0 = arith.constant 0 : i32
    return %arg0, %c0_i32 : i32, i32
  }
  func.func @transform_5(%arg0: i32, %arg1: i32) -> (i32, i32) {
    %c0_i32 = arith.constant 0 : i32
    %c0_i32_0 = arith.constant 0 : i32
    return %arg0, %c0_i32 : i32, i32
  }
  func.func @transform_6(%arg0: i32, %arg1: i32) -> (i32, i32) {
    %c0_i32 = arith.constant 0 : i32
    %c0_i32_0 = arith.constant 0 : i32
    return %arg0, %c0_i32 : i32, i32
  }
}

</mosaic_0001>

<bundles_post_ra>
// kernel: tpu_custom_call.1
= control target key start
LH: loop header
LB: loop body
LE: loop exit
PB: predicated region body
PF: predicated region fallthrough
CT: control target
= control target key end

     0   :  { %12 = vsyncpa [#allocation11], 0  ;;  %s1202_s0 = inlined_call_operand.vmem [shape: f32[8,128], index: 0, kind: input, shape index: {}]   ;;  %s1203_s1 = inlined_call_operand.hbm [shape: bf16[128,128], index: 1, kind: input, shape index: {}]   ;;  %s1204_s2 = inlined_call_operand.vmem [shape: s32[8,1], index: 2, kind: input, shape index: {}]   ;;  %s1205_s3 = inlined_call_operand.hbm [shape: f32[8,128], index: 3, kind: output, shape index: {0}]   ;;  %s1206_s4 = inlined_call_operand.vmem [shape: f32[8,1], index: 4, kind: output, shape index: {1}]   ;;  %s1207_s5 = inlined_call_operand.vmem [shape: f32[8,1], index: 5, kind: output, shape index: {2}]   ;;  %s1208_s6 = inlined_call_operand.vmem [shape: f32[8,1], index: 6, kind: output, shape index: {3}]  }
   0x1   :  { %13 = vsyncpa [#allocation12], 0  ;;  %s20_s23 = sshll.u32 %s1203_s1, 4  ;;  %s768_s24 = smov [#allocation10]   ;;  %s21_s23 = int_to_ptr.hbm [resolvable:$true] %s20_s23 }
   0x2   :  { %s22_s25 = sshll.u32 %s768_s24, 4  ;;  %s769_s26 = smov 64   ;;  %s23_s25 = int_to_ptr.vmem [resolvable:$true] %s22_s25 }
   0x3   :  { %s770_s27 = smov 4  }
   0x4   :  { %28 = dma.hbm_to_vmem [thread:$0]  %s21_s23, 1024, %s23_s25, [#allocation11], %s769_s26, %s769_s26, %s770_s27  }
   0x5   :  { %764 = dma.done.wait [#allocation11], 1024  }
   0x6   :  { %765 = vsyncadd [#allocation11], 4294966272  ;;  %v39_v0 = vld [vmem:[%s1202_s0] sm:$0xff]  ;;  %v68_v2 = vld [vmem:[#allocation10 + $0xc] sm:$0xff]   ;;  %vm54_vm0 = vcmask 7168   ;;  %v771_v53 = vmov 0  }
   0x7   :  { %v66_v1 = vld [vmem:[#allocation10 + $0x4] sm:$0xff]   ;;  %v40_v3 = vmul.f32 %v39_v0, %v39_v0  ;;  %v84_v5 = vunpack.c.l.bf16 %v68_v2  ;;  %v65_v6 = vld [vmem:[#allocation10] sm:$0xf]  ;;  %v663_v7 = vld [vmem:[#allocation10 + $0x38] sm:$0xff]  ;;  %v85_v12 = vunpack.c.h.bf16 %v68_v2  ;;  %v57_v37 = vpack.c.bf16 %v39_v0, %v39_v0  ;;  %672 = vset.pattern.permute.xlu0 %v771_v53  ;;  %64 = vst.msk [vmem:[#allocation9] sm:$0xff] %vm54_vm0, %v771_v53  ;;  %671 = vset.pattern.permute.xlu2 %v771_v53  ;;  %s601_s9 = sshll.u32 %s1205_s3, 4  ;;  %s602_s9 = int_to_ptr.hbm [resolvable:$true] %s601_s9 }
   0x8   :  { %v82_v4 = vunpack.c.l.bf16 %v66_v1  ;;  %v81_v10 = vunpack.c.l.bf16 %v65_v6  ;;  %370 = vmatpush.bf16.xpose.msra.mxu0 %v663_v7  ;;  %v83_v11 = vunpack.c.h.bf16 %v66_v1  ;;  %v662_v14 = vld [vmem:[#allocation10 + $0x30] sm:$0xff]  ;;  %v72_v18 = vld [vmem:[#allocation10 + $0x1c] sm:$0xff]   ;;  %v661_v23 = vld [vmem:[#allocation10 + $0x28] sm:$0xff]  ;;  %673 = vset.pattern.permute.xlu1 %v771_v53  ;;  %vm411_vm9 = vcmask 130112  }
   0x9   :  { %41 = vadd.xlane.f32.xlu0 %v40_v3  ;;  %v100_v9 = vmul.f32 %v84_v5, %v84_v5  ;;  %v70_v15 = vld [vmem:[#allocation10 + $0x14] sm:$0xff]   ;;  %v101_v17 = vmul.f32 %v85_v12, %v85_v12  ;;  %v88_v21 = vunpack.c.l.bf16 %v72_v18  ;;  %v74_v26 = vld [vmem:[#allocation10 + $0x24] sm:$0xff]   ;;  %v89_v27 = vunpack.c.h.bf16 %v72_v18  ;;  %v76_v32 = vld [vmem:[#allocation10 + $0x2c] sm:$0xff]   ;;  %58 = vst [vmem:[#allocation2] sm:$0xf] %v57_v37 }
   0xa   :  { %v98_v8 = vmul.f32 %v82_v4, %v82_v4  ;;  %v97_v13 = vmul.f32 %v81_v10, %v81_v10  ;;  %v99_v16 = vmul.f32 %v83_v11, %v83_v11  ;;  %v86_v19 = vunpack.c.l.bf16 %v70_v15  ;;  %v660_v31 = vld [vmem:[#allocation10 + $0x20] sm:$0xff]  ;;  %v78_v35 = vld [vmem:[#allocation10 + $0x34] sm:$0xff]   ;;  %v80_v44 = vld [vmem:[#allocation10 + $0x3c] sm:$0xf] }
   0xb   :  { %119 = vadd.xlane.f32.xlu2 %v100_v9  ;;  %v87_v20 = vunpack.c.h.bf16 %v70_v15  ;;  %v104_v25 = vmul.f32 %v88_v21, %v88_v21  ;;  %v90_v28 = vunpack.c.l.bf16 %v74_v26  ;;  %v91_v29 = vunpack.c.h.bf16 %v74_v26  ;;  %v659_v41 = vld [vmem:[#allocation10 + $0x18] sm:$0xff]  ;;  %v658_v48 = vld [vmem:[#allocation10 + $0x10] sm:$0xff]  ;;  %v657_v50 = vld [vmem:[#allocation10 + $0x8] sm:$0xff] }
   0xc   :  { %115 = vadd.xlane.f32.xlu1 %v98_v8  ;;  %v102_v22 = vmul.f32 %v86_v19, %v86_v19  ;;  %v105_v30 = vmul.f32 %v89_v27, %v89_v27  ;;  %v92_v36 = vunpack.c.l.bf16 %v76_v32  ;;  %v93_v38 = vunpack.c.h.bf16 %v76_v32  ;;  %v656_v51 = vld [vmem:[#allocation10] sm:$0xff] }
   0xd   :  { %v103_v24 = vmul.f32 %v87_v20, %v87_v20  ;;  %v106_v33 = vmul.f32 %v90_v28, %v90_v28  ;;  %v107_v34 = vmul.f32 %v91_v29, %v91_v29  ;;  %v94_v39 = vunpack.c.l.bf16 %v78_v35  ;;  %v820_v54 = vld [vmem:[%s1204_s2] sm:$0xff]  ;;  %s774_s2 = smov [#allocation13]  }
   0xe   :  { %v108_v40 = vmul.f32 %v92_v36, %v92_v36  ;;  %v109_v42 = vmul.f32 %v93_v38, %v93_v38  ;;  %v95_v45 = vunpack.c.h.bf16 %v78_v35  ;;  %v96_v46 = vunpack.c.l.bf16 %v80_v44  ;;  %s599_s30 = sshll.u32 %s774_s2, 4  ;;  %s600_s30 = int_to_ptr.vmem [resolvable:$true] %s599_s30 }
   0xf   :  { %v110_v43 = vmul.f32 %v94_v39, %v94_v39  ;;  %v406_v29 = vlaneseq  ;;  %vm415_vm15 = vcmask 195712  }
  0x10   :  { %371 = vmatpush.bf16.xpose.msra.mxu0 %v662_v14  ;;  %v111_v47 = vmul.f32 %v95_v45, %v95_v45  ;;  %v112_v49 = vmul.f32 %v96_v46, %v96_v46  ;;  %v321_v52 = vld [vmem:[#allocation2] sm:$0xf] }
  0x11   :  { %113 = vadd.xlane.f32.xlu0 %v97_v13  ;;  %v876_v38 = vand.u32 127, %v406_v29 }
  0x13   :  { %121 = vadd.xlane.f32.xlu2 %v101_v17 }
  0x14   :  { %117 = vadd.xlane.f32.xlu1 %v99_v16 }
  0x18   :  { %372 = vmatpush.bf16.xpose.msra.mxu0 %v661_v23 }
  0x19   :  { %123 = vadd.xlane.f32.xlu0 %v102_v22 }
  0x1b   :  { %127 = vadd.xlane.f32.xlu2 %v104_v25 }
  0x1c   :  { %125 = vadd.xlane.f32.xlu1 %v103_v24 }
  0x20   :  { %373 = vmatpush.bf16.xpose.msra.mxu0 %v660_v31 }
  0x21   :  { %129 = vadd.xlane.f32.xlu0 %v105_v30 }
  0x23   :  { %133 = vadd.xlane.f32.xlu2 %v107_v34 }
  0x24   :  { %131 = vadd.xlane.f32.xlu1 %v106_v33 }
  0x28   :  { %374 = vmatpush.bf16.xpose.msra.mxu0 %v659_v41 }
  0x29   :  { %135 = vadd.xlane.f32.xlu0 %v108_v40 }
  0x2b   :  { %139 = vadd.xlane.f32.xlu2 %v110_v43 }
  0x2c   :  { %137 = vadd.xlane.f32.xlu1 %v109_v42 }
  0x30   :  { %375 = vmatpush.bf16.xpose.msra.mxu0 %v658_v48 }
  0x31   :  { %141 = vadd.xlane.f32.xlu0 %v111_v47 }
  0x34   :  { %143 = vadd.xlane.f32.xlu1 %v112_v49  ;;  %v409_v49 = vadd.s32 4294967288, %v876_v38 }
  0x38   :  { %376 = vmatpush.bf16.xpose.msra.mxu0 %v657_v50 }
  0x40   :  { %377 = vmatpush.bf16.xpose.msra.mxu0 %v656_v51 }
  0x45   :  { %507 = vperm.xlu0 %672, %v820_v54  }
  0x47   :  { %378 = vmatmul.bf16.vlgmr.msra.gmra.mxu0 %v321_v52 }
  0x7c   :  { %v42_v55 = vpop.xlane.xlu0 %41 }
  0x7d   :  { %v43_v56 = vmax.f32 %v42_v55, 1e-12 }
  0x7e   :  { %v120_v2 = vpop.xlane.xlu2 %119 }
  0x7f   :  { %674 = vrsqrt.f32 %v43_v56  ;;  %vm50_vm2 = vweird.f32 %v43_v56  ;;  %v116_v0 = vpop.xlane.xlu1 %115  ;;  %v832_v9 = vmax.f32 %v120_v2, 1e-12  ;;  %v413_v2 = vadd.s32 4294967280, %v876_v38 }
  0x80   :  { %v824_v4 = vmax.f32 %v116_v0, 1e-12 }
  0x81   :  { %vm197_vm13 = vweird.f32 %v832_v9 }
  0x82   :  { %676 = vrsqrt.f32 %v824_v4  ;;  %vm177_vm4 = vweird.f32 %v824_v4 }
  0x84   :  { %v114_v3 = vpop.xlane.xlu0 %113 }
  0x85   :  { %v675_v57 = vpop.eup %674  ;;  %v826_v6 = vmax.f32 %v114_v3, 1e-12 }
  0x86   :  { %v45_v58 = vmul.f32 %v675_v57, %v43_v56  ;;  %vm51_vm1 = vweird.f32 %v675_v57  ;;  %v122_v8 = vpop.xlane.xlu2 %121 }
  0x87   :  { %vm52_vm3 = vmor %vm50_vm2, %vm51_vm1  ;;  %v118_v5 = vpop.xlane.xlu1 %117  ;;  %678 = vrsqrt.f32 %v826_v6  ;;  %v838_v12 = vmax.f32 %v122_v8, 1e-12  ;;  %vm167_vm6 = vweird.f32 %v826_v6 }
  0x88   :  { %v46_v59 = vmul.f32 %v675_v57, %v45_v58  ;;  %v829_v7 = vmax.f32 %v118_v5, 1e-12  ;;  %v835_v11 = vpop.eup %676 }
  0x89   :  { %v172_v15 = vmul.f32 %v835_v11, %v824_v4  ;;  %vm178_vm5 = vweird.f32 %v835_v11 }
  0x8a   :  { %v47_v60 = vmul.f32 0.5, %v46_v59  ;;  %680 = vrsqrt.f32 %v829_v7  ;;  %vm899_vm8 = vmor %vm177_vm4, %vm178_vm5  ;;  %vm187_vm10 = vweird.f32 %v829_v7  ;;  %vm207_vm4 = vweird.f32 %v838_v12 }
  0x8b   :  { %682 = vrsqrt.f32 %v832_v9  ;;  %v173_v22 = vmul.f32 %v835_v11, %v172_v15 }
  0x8c   :  { %v48_v61 = vsub.f32 1.5, %v47_v60  ;;  %v124_v10 = vpop.xlane.xlu0 %123  ;;  %684 = vrsqrt.f32 %v838_v12 }
  0x8d   :  { %v840_v14 = vpop.eup %678  ;;  %v844_v16 = vmax.f32 %v124_v10, 1e-12  ;;  %v174_v31 = vmul.f32 0.5, %v173_v22 }
  0x8e   :  { %v49_v62 = vmul.f32 %v675_v57, %v48_v61  ;;  %v162_v18 = vmul.f32 %v840_v14, %v826_v6  ;;  %v128_v19 = vpop.xlane.xlu2 %127  ;;  %vm168_vm7 = vweird.f32 %v840_v14 }
  0x8f   :  { %v126_v13 = vpop.xlane.xlu1 %125  ;;  %686 = vrsqrt.f32 %v844_v16  ;;  %v862_v27 = vmax.f32 %v128_v19, 1e-12  ;;  %v175_v40 = vsub.f32 1.5, %v174_v31  ;;  %vm913_vm11 = vmor %vm167_vm6, %vm168_vm7  ;;  %vm423_vm6 = vcmask 326912  }
  0x90   :  { %v53_v63 = vsel %vm52_vm3, %v675_v57, %v49_v62  ;;  %v846_v17 = vpop.eup %680  ;;  %v853_v21 = vmax.f32 %v126_v13, 1e-12  ;;  %v163_v25 = vmul.f32 %v840_v14, %v162_v18  ;;  %v904_v57 = vadd.s32 4294967272, %v876_v38 }
  0x91   :  { %55 = vst.msk [vmem:[#allocation3] sm:$0xff] %vm54_vm0, %v53_v63  ;;  %v851_v20 = vpop.eup %682  ;;  %v182_v23 = vmul.f32 %v846_v17, %v829_v7  ;;  %v176_v52 = vmul.f32 %v835_v11, %v175_v40  ;;  %vm188_vm12 = vweird.f32 %v846_v17  ;;  %vm419_vm3 = vcmask 261312  }
  0x92   :  { %v192_v26 = vmul.f32 %v851_v20, %v832_v9  ;;  %v864_v28 = vpop.eup %684  ;;  %688 = vrsqrt.f32 %v853_v21  ;;  %v164_v33 = vmul.f32 0.5, %v163_v25  ;;  %vm198_vm14 = vweird.f32 %v851_v20  ;;  %vm938_vm1 = vmor %vm187_vm10, %vm188_vm12 }
  0x93   :  { %v183_v32 = vmul.f32 %v846_v17, %v182_v23  ;;  %v202_v37 = vmul.f32 %v864_v28, %v838_v12  ;;  %690 = vrsqrt.f32 %v862_v27  ;;  %v180_v4 = vsel %vm899_vm8, %v835_v11, %v176_v52  ;;  %vm956_vm2 = vmor %vm197_vm13, %vm198_vm14 }
  0x94   :  { %v130_v24 = vpop.xlane.xlu0 %129  ;;  %v193_v36 = vmul.f32 %v851_v20, %v192_v26  ;;  %v165_v44 = vsub.f32 1.5, %v164_v33  ;;  %v410_v7 = vperm.slane %v180_v4, %v409_v49  ;;  %vm208_vm5 = vweird.f32 %v864_v28 }
  0x95   :  { %v868_v34 = vmax.f32 %v130_v24, 1e-12  ;;  %v870_v35 = vpop.eup %686  ;;  %v184_v41 = vmul.f32 0.5, %v183_v32  ;;  %v203_v47 = vmul.f32 %v864_v28, %v202_v37  ;;  %v421_v33 = vadd.s32 4294967264, %v876_v38  ;;  %vm985_vm8 = vmor %vm207_vm4, %vm208_vm5 }
  0x96   :  { %v134_v39 = vpop.xlane.xlu2 %133  ;;  %v212_v45 = vmul.f32 %v870_v35, %v844_v16  ;;  %v194_v46 = vmul.f32 0.5, %v193_v36  ;;  %v166_v58 = vmul.f32 %v840_v14, %v165_v44  ;;  %vm217_vm7 = vweird.f32 %v844_v16 }
  0x97   :  { %v132_v30 = vpop.xlane.xlu1 %131  ;;  %692 = vrsqrt.f32 %v868_v34  ;;  %v891_v50 = vmax.f32 %v134_v39, 1e-12  ;;  %v185_v53 = vsub.f32 1.5, %v184_v41  ;;  %v204_v63 = vmul.f32 0.5, %v203_v47 }
  0x98   :  { %v383_v1 = vld [vmem:[#allocation3] sm:$0xff]  ;;  %v878_v42 = vmax.f32 %v132_v30, 1e-12  ;;  %v880_v43 = vpop.eup %688  ;;  %v213_v59 = vmul.f32 %v870_v35, %v212_v45  ;;  %v195_v61 = vsub.f32 1.5, %v194_v46  ;;  %v170_v8 = vsel %vm913_vm11, %v840_v14, %v166_v58 }
  0x99   :  { %386 = vperm.xlu2 %671, %v383_v1   ;;  %v893_v51 = vpop.eup %690  ;;  %v222_v55 = vmul.f32 %v880_v43, %v853_v21  ;;  %v186_v5 = vmul.f32 %v846_v17, %v185_v53  ;;  %v205_v22 = vsub.f32 1.5, %v204_v63  ;;  %v408_v26 = vperm.slane %v170_v8, %v876_v38 }
  0x9a   :  { %694 = vrsqrt.f32 %v878_v42  ;;  %v232_v3 = vmul.f32 %v893_v51, %v862_v27  ;;  %v214_v13 = vmul.f32 0.5, %v213_v59  ;;  %v196_v19 = vmul.f32 %v851_v20, %v195_v61 }
  0x9b   :  { %696 = vrsqrt.f32 %v891_v50  ;;  %v223_v6 = vmul.f32 %v880_v43, %v222_v55  ;;  %v190_v29 = vsel %vm938_vm1, %v846_v17, %v186_v5  ;;  %v206_v17 = vmul.f32 %v864_v28, %v205_v22 }
  0x9c   :  { %v136_v48 = vpop.xlane.xlu0 %135  ;;  %v233_v25 = vmul.f32 %v893_v51, %v232_v3  ;;  %v215_v36 = vsub.f32 1.5, %v214_v13  ;;  %v200_v39 = vsel %vm956_vm2, %v851_v20, %v196_v19  ;;  %v414_v41 = vperm.slane %v190_v29, %v413_v2 }
  0x9d   :  { %v918_v0 = vmax.f32 %v136_v48, 1e-12  ;;  %v920_v1 = vpop.eup %692  ;;  %v224_v30 = vmul.f32 0.5, %v223_v6  ;;  %vm218_vm10 = vweird.f32 %v870_v35  ;;  %v412_v48 = vsel %vm411_vm9, %v410_v7, %v408_v26 }
  0x9e   :  { %v140_v11 = vpop.xlane.xlu2 %139  ;;  %v242_v23 = vmul.f32 %v920_v1, %v868_v34  ;;  %v234_v45 = vmul.f32 0.5, %v233_v25  ;;  %v418_v12 = vperm.slane %v200_v39, %v904_v57  ;;  %v216_v53 = vmul.f32 %v870_v35, %v215_v36  ;;  %vm1007_vm9 = vmor %vm217_vm7, %vm218_vm10 }
  0x9f   :  { %v138_v60 = vpop.xlane.xlu1 %137  ;;  %698 = vrsqrt.f32 %v918_v0  ;;  %v967_v31 = vmax.f32 %v140_v11, 1e-12  ;;  %v225_v49 = vsub.f32 1.5, %v224_v30  ;;  %vm227_vm11 = vweird.f32 %v853_v21 }
  0xa0   :  { %v942_v15 = vmax.f32 %v138_v60, 1e-12  ;;  %v944_v18 = vpop.eup %694  ;;  %v243_v40 = vmul.f32 %v920_v1, %v242_v23  ;;  %v210_v56 = vsel %vm985_vm8, %v864_v28, %v206_v17  ;;  %vm228_vm12 = vweird.f32 %v880_v43 }
  0xa1   :  { %v969_v32 = vpop.eup %696  ;;  %v252_v37 = vmul.f32 %v944_v18, %v878_v42  ;;  %v416_v62 = vsel %vm415_vm15, %v414_v41, %v412_v48  ;;  %v235_v63 = vsub.f32 1.5, %v234_v45  ;;  %v425_v16 = vadd.s32 4294967256, %v876_v38  ;;  %vm1031_vm14 = vmor %vm227_vm11, %vm228_vm12 }
  0xa2   :  { %700 = vrsqrt.f32 %v942_v15  ;;  %v262_v52 = vmul.f32 %v969_v32, %v891_v50  ;;  %v244_v59 = vmul.f32 0.5, %v243_v40  ;;  %v226_v2 = vmul.f32 %v880_v43, %v225_v49 }
  0xa3   :  { %702 = vrsqrt.f32 %v967_v31  ;;  %v253_v55 = vmul.f32 %v944_v18, %v252_v37  ;;  %vm237_vm13 = vweird.f32 %v862_v27  ;;  %v422_v4 = vperm.slane %v210_v56, %v421_v33 }
  0xa4   :  { %v142_v9 = vpop.xlane.xlu0 %141  ;;  %v263_v3 = vmul.f32 %v969_v32, %v262_v52  ;;  %v220_v5 = vsel %vm1007_vm9, %v870_v35, %v216_v53  ;;  %vm238_vm15 = vweird.f32 %v893_v51  ;;  %v420_v13 = vsel %vm419_vm3, %v418_v12, %v416_v62 }
  0xa5   :  { %v990_v20 = vmax.f32 %v142_v9, 1e-12  ;;  %v992_v47 = vpop.eup %698  ;;  %v254_v8 = vmul.f32 0.5, %v253_v55  ;;  %v245_v11 = vsub.f32 1.5, %v244_v59  ;;  %v429_v35 = vadd.s32 4294967248, %v876_v38  ;;  %vm1051_vm2 = vmor %vm237_vm13, %vm238_vm15 }
  0xa6   :  { %v272_v28 = vmul.f32 %v992_v47, %v918_v0  ;;  %v236_v21 = vmul.f32 %v893_v51, %v235_v63  ;;  %vm247_vm1 = vweird.f32 %v868_v34  ;;  %v426_v23 = vperm.slane %v220_v5, %v425_v16 }
  0xa7   :  { %v144_v46 = vpop.xlane.xlu1 %143  ;;  %704 = vrsqrt.f32 %v990_v20  ;;  %v230_v7 = vsel %vm1031_vm14, %v880_v43, %v226_v2  ;;  %vm248_vm3 = vweird.f32 %v920_v1  ;;  %v264_v25 = vmul.f32 0.5, %v263_v3 }
  0xa8   :  { %v1012_v57 = vmax.f32 %v144_v46, 1e-12  ;;  %v1014_v61 = vpop.eup %700  ;;  %v273_v22 = vmul.f32 %v992_v47, %v272_v28  ;;  %v424_v29 = vsel %vm423_vm6, %v422_v4, %v420_v13  ;;  %vm427_vm4 = vcmask 392512   ;;  %vm1070_vm6 = vmor %vm247_vm1, %vm248_vm3 }
  0xa9   :  { %v1036_v10 = vpop.eup %702  ;;  %v282_v19 = vmul.f32 %v1014_v61, %v942_v15  ;;  %v255_v30 = vsub.f32 1.5, %v254_v8  ;;  %v433_v43 = vadd.s32 4294967240, %v876_v38  ;;  %v246_v27 = vmul.f32 %v920_v1, %v245_v11 }
  0xaa   :  { %706 = vrsqrt.f32 %v1012_v57  ;;  %v292_v9 = vmul.f32 %v1036_v10, %v967_v31  ;;  %vm257_vm5 = vweird.f32 %v878_v42  ;;  %v430_v36 = vperm.slane %v230_v7, %v429_v35 }
  0xab   :  { %v283_v33 = vmul.f32 %v1014_v61, %v282_v19  ;;  %v240_v37 = vsel %vm1051_vm2, %v893_v51, %v236_v21  ;;  %vm258_vm7 = vweird.f32 %v944_v18  ;;  %v274_v17 = vmul.f32 0.5, %v273_v22 }
  0xac   :  { %v428_v41 = vsel %vm427_vm4, %v426_v23, %v424_v29  ;;  %vm431_vm8 = vcmask 458112   ;;  %v265_v44 = vsub.f32 1.5, %v264_v25  ;;  %v437_v46 = vadd.s32 4294967232, %v876_v38  ;;  %vm1088_vm11 = vmor %vm257_vm5, %vm258_vm7 }
  0xad   :  { %v1056_v26 = vpop.eup %704  ;;  %v256_v51 = vmul.f32 %v944_v18, %v255_v30  ;;  %vm267_vm10 = vweird.f32 %v891_v50  ;;  %v293_v34 = vmul.f32 %v1036_v10, %v292_v9  ;;  %v434_v48 = vperm.slane %v240_v37, %v433_v43 }
  0xae   :  { %v302_v45 = vmul.f32 %v1056_v26, %v990_v20  ;;  %v250_v49 = vsel %vm1070_vm6, %v920_v1, %v246_v27  ;;  %vm268_vm9 = vweird.f32 %v969_v32  ;;  %v284_v12 = vmul.f32 0.5, %v283_v33 }
  0xaf   :  { %v432_v53 = vsel %vm431_vm8, %v430_v36, %v428_v41  ;;  %vm435_vm12 = vcmask 523712   ;;  %v275_v55 = vsub.f32 1.5, %v274_v17  ;;  %v441_v58 = vadd.s32 4294967224, %v876_v38  ;;  %vm1104_vm14 = vmor %vm267_vm10, %vm268_vm9 }
  0xb0   :  { %v1075_v40 = vpop.eup %706  ;;  %v266_v59 = vmul.f32 %v969_v32, %v265_v44  ;;  %vm277_vm13 = vweird.f32 %v918_v0  ;;  %v303_v42 = vmul.f32 %v1056_v26, %v302_v45  ;;  %v438_v1 = vperm.slane %v250_v49, %v437_v46 }
  0xb1   :  { %v312_v56 = vmul.f32 %v1075_v40, %v1012_v57  ;;  %vm278_vm15 = vweird.f32 %v992_v47  ;;  %v294_v63 = vmul.f32 0.5, %v293_v34  ;;  %v436_v28 = vsel %vm435_vm12, %v434_v48, %v432_v53 }
  0xb2   :  { %vm439_vm1 = vcmask 589312   ;;  %v285_v16 = vsub.f32 1.5, %v284_v12  ;;  %v445_v2 = vadd.s32 4294967216, %v876_v38  ;;  %v276_v3 = vmul.f32 %v992_v47, %v275_v55  ;;  %vm1118_vm3 = vmor %vm277_vm13, %vm278_vm15 }
  0xb3   :  { %vm287_vm2 = vweird.f32 %v942_v15  ;;  %v270_v50 = vsel %vm1104_vm14, %v969_v32, %v266_v59  ;;  %vm288_vm4 = vweird.f32 %v1014_v61  ;;  %v304_v6 = vmul.f32 0.5, %v303_v42 }
  0xb4   :  { %v440_v8 = vsel %vm439_vm1, %v438_v1, %v436_v28  ;;  %vm443_vm5 = vcmask 654912   ;;  %v295_v13 = vsub.f32 1.5, %v294_v63  ;;  %v449_v11 = vadd.s32 4294967208, %v876_v38  ;;  %vm1131_vm7 = vmor %vm287_vm2, %vm288_vm4 }
  0xb5   :  { %v286_v19 = vmul.f32 %v1014_v61, %v285_v16  ;;  %vm297_vm6 = vweird.f32 %v967_v31  ;;  %v446_v35 = vperm.slane %v270_v50, %v445_v2  ;;  %v280_v0 = vsel %vm1118_vm3, %v992_v47, %v276_v3 }
  0xb6   :  { %vm298_vm8 = vweird.f32 %v1036_v10  ;;  %vm447_vm10 = vcmask 720512   ;;  %v305_v23 = vsub.f32 1.5, %v304_v6  ;;  %v453_v7 = vadd.s32 4294967200, %v876_v38 }
  0xb7   :  { %v296_v31 = vmul.f32 %v1036_v10, %v295_v13  ;;  %v450_v24 = vperm.slane %v280_v0, %v449_v11  ;;  %v290_v47 = vsel %vm1131_vm7, %v1014_v61, %v286_v19  ;;  %vm307_vm9 = vweird.f32 %v990_v20  ;;  %v508_v46 = vpop.permute.xlu0 %507 }
  0xb8   :  { %vm308_vm12 = vweird.f32 %v1056_v26  ;;  %vm451_vm13 = vcmask 786112   ;;  %v457_v30 = vadd.s32 4294967192, %v876_v38  ;;  %v306_v9 = vmul.f32 %v1056_v26, %v305_v23 }
  0xb9   :  { %v454_v43 = vperm.slane %v290_v47, %v453_v7  ;;  %vm309_vm14 = vmor %vm307_vm9, %vm308_vm12  ;;  %vm317_vm15 = vweird.f32 %v1012_v57  ;;  %vm318_vm1 = vweird.f32 %v1075_v40  ;;  %vm455_vm2 = vcmask 851712  }
  0xba   :  { %v461_v27 = vadd.s32 4294967184, %v876_v38  ;;  %v310_v37 = vsel %vm309_vm14, %v1056_v26, %v306_v9  ;;  %vm319_vm3 = vmor %vm317_vm15, %vm318_vm1  ;;  %vm459_vm4 = vcmask 917312   ;;  %v465_v17 = vadd.s32 4294967176, %v876_v38 }
  0xbb   :  { %vm509_vm7 = vcmp.eq.s32.totalorder %v876_v38, %v508_v46  ;;  %v772_v55 = vmov -inf   ;;  %v773_v5 = vmov 0.0  }
  0xbc   :  { %63 = vst.msk [vmem:[#allocation8] sm:$0xff] %vm54_vm0, %v772_v55 }
  0xbd   :  { %59 = vst.msk [vmem:[#allocation4] sm:$0xff] %vm54_vm0, %v772_v55 }
  0xbe   :  { %61 = vst.msk [vmem:[#allocation6] sm:$0xff] %vm54_vm0, %v773_v5 }
  0xbf   :  { %60 = vst.msk [vmem:[#allocation5] sm:$0xff] %vm54_vm0, %v773_v5 }
  0xc0   :  { %62 = vst.msk [vmem:[#allocation7] sm:$0xff] %vm54_vm0, %v773_v5 }
  0xc3   :  { %v568_v6 = vld [vmem:[#allocation8] sm:$0xff] }
  0xc4   :  { %v950_v14 = vpop.f32.mrf.mxu0 }
  0xcc   :  { %v381_v60 = vpop.f32.mrf.mxu0 }
  0xcd   :  { %v260_v60 = vsel %vm1088_vm11, %v944_v18, %v256_v51  ;;  %v313_v18 = vmul.f32 %v1075_v40, %v312_v56  ;;  %vm1141_vm11 = vmor %vm297_vm6, %vm298_vm8  ;;  %vm467_vm6 = vcmask 1048512  }
  0xce   :  { %v442_v4 = vperm.slane %v260_v60, %v441_v58  ;;  %v300_v61 = vsel %vm1141_vm11, %v1036_v10, %v296_v31  ;;  %v462_v10 = vperm.slane %v310_v37, %v461_v27  ;;  %vm512_vm11 = vcmp.lt.s32.totalorder %v876_v38, 16 }
  0xcf   :  { %v314_v21 = vmul.f32 0.5, %v313_v18  ;;  %v458_v36 = vperm.slane %v300_v61, %v457_v30  ;;  %v540_v30 = vld [vmem:[#allocation6] sm:$0xff] }
  0xd0   :  { %v444_v22 = vsel %vm443_vm5, %v442_v4, %v440_v8  ;;  %vm463_vm5 = vcmask 982912   ;;  %v517_v8 = vld [vmem:[#allocation4] sm:$0xff] }
  0xd1   :  { %v448_v25 = vsel %vm447_vm10, %v446_v35, %v444_v22  ;;  %v315_v29 = vsub.f32 1.5, %v314_v21 }
  0xd2   :  { %v452_v20 = vsel %vm451_vm13, %v450_v24, %v448_v25 }
  0xd3   :  { %v316_v33 = vmul.f32 %v1075_v40, %v315_v29  ;;  %v456_v39 = vsel %vm455_vm2, %v454_v43, %v452_v20 }
  0xd4   :  { %v460_v57 = vsel %vm459_vm4, %v458_v36, %v456_v39 }
  0xd5   :  { %v320_v41 = vsel %vm319_vm3, %v1075_v40, %v316_v33  ;;  %v464_v45 = vsel %vm463_vm5, %v462_v10, %v460_v57  ;;  %v572_v57 = vld [vmem:[#allocation9] sm:$0xff] }
  0xd6   :  { %v466_v44 = vperm.slane %v320_v41, %v465_v17  ;;  %v521_v17 = vld [vmem:[#allocation5] sm:$0xff] }
  0xd8   :  { %v468_v48 = vsel %vm467_vm6, %v466_v44, %v464_v45 }
  0xf3   :  { %v387_v51 = vpop.permute.xlu2 %386 }
  0xf4   :  { %v389_v34 = vmul.f32 %v387_v51, %v950_v14 }
  0xf6   :  { %v482_v26 = vmul.f32 %v468_v48, %v389_v34 }
  0xf8   :  { %v483_v49 = vmul.f32 %v482_v26, %v482_v26  ;;  %v547_v52 = vsel %vm509_vm7, %v482_v26, 0.0  ;;  %v499_v16 = vmul.f32 0.87758255, %v482_v26 }
  0xfa   :  { %v484_v12 = vsub.f32 1.0, %v483_v49 }
  0xfc   :  { %v485_v53 = vmax.f32 %v484_v12, 0.0 }
  0xfe   :  { %v486_v40 = vmin.f32 %v485_v53, 1.0 }
 0x100   :  { %708 = vrsqrt.f32 %v486_v40  ;;  %vm494_vm8 = vcmp.eq.f32.partialorder %v486_v40, inf  ;;  %v497_v62 = vand.u32 2147483648, %v486_v40  ;;  %vm496_vm10 = vcmp.eq.f32.partialorder %v486_v40, 0.0 }
 0x106   :  { %v709_v56 = vpop.eup %708 }
 0x107   :  { %v488_v58 = vmul.f32 %v709_v56, %v486_v40 }
 0x109   :  { %v489_v14 = vmul.f32 %v709_v56, %v488_v58 }
 0x10b   :  { %v490_v59 = vmul.f32 0.5, %v489_v14 }
 0x10d   :  { %v491_v42 = vsub.f32 1.5, %v490_v59 }
 0x10f   :  { %v492_v1 = vmul.f32 %v709_v56, %v491_v42 }
 0x111   :  { %v493_v60 = vmul.f32 %v492_v1, %v486_v40 }
 0x113   :  { %v495_v63 = vsel %vm494_vm8, %v486_v40, %v493_v60 }
 0x114   :  { %v498_v28 = vsel %vm496_vm10, %v497_v62, %v495_v63 }
 0x115   :  { %v500_v2 = vmul.f32 0.47942555, %v498_v28 }
 0x117   :  { %v501_v3 = vsub.f32 %v499_v16, %v500_v2 }
 0x119   :  { %v510_v18 = vsel %vm509_vm7, %v501_v3, %v482_v26 }
 0x11a   :  { %v511_v4 = vmul.f32 30.0, %v510_v18 }
 0x11c   :  { %v515_v50 = vsel %vm512_vm11, %v511_v4, -1e+30 }
 0x11d   :  { %516 = vst [vmem:[#allocation13] sm:$0xff] %v515_v50  ;;  %518 = vmax.xlane.f32.xlu1 %v515_v50  ;;  %v541_v22 = vsel %vm509_vm7, %v515_v50, 0.0 }
 0x11e   :  { %604 = dma.vmem_to_hbm [thread:$0]  %s600_s30, 128, %s602_s9, [#allocation12]  }
 0x190   :  { %v519_v13 = vpop.xlane.xlu1 %518 }
 0x191   :  { %vm569_vm9 = vcmp.gt.f32.partialorder %v519_v13, %v568_v6  ;;  %v520_v11 = vmax.f32 %v517_v8, %v519_v13  ;;  %vm552_vm12 = vcmp.eq.f32.partialorder %v515_v50, %v519_v13 }
 0x192   :  { %v570_v19 = vsel %vm569_vm9, %v519_v13, %v568_v6  ;;  %v553_v35 = vsel %vm552_vm12, %v876_v38, 1073741824  ;;  %v546_v38 = vld [vmem:[#allocation7] sm:$0xff] }
 0x193   :  { %571 = vst.msk [vmem:[#allocation8] sm:$0xff] %vm54_vm0, %v570_v19  ;;  %528 = vperm.xlu1 %673, %v520_v11   ;;  %v522_v0 = vsub.f32 %v517_v8, %v520_v11  ;;  %v555_v32 = vshra.s32 %v553_v35, 16  ;;  %v554_v31 = vand.u32 65535, %v553_v35 }
 0x194   :  { %539 = vst.msk [vmem:[#allocation4] sm:$0xff] %vm54_vm0, %v520_v11 }
 0x195   :  { %v557_v21 = vcvt.s32.f32 %v555_v32  ;;  %v556_v15 = vcvt.s32.f32 %v554_v31  ;;  %v523_v33 = vmul.f32 1.442695, %v522_v0 }
 0x197   :  { %558 = vmin.xlane.f32.xlu2 %v557_v21 }
 0x19b   :  { %v578_v53 = vld [vmem:[#allocation4] sm:$0xff] }
 0x19f   :  { %542 = vadd.xlane.f32.xlu2 %v541_v22 }
 0x1a7   :  { %548 = vadd.xlane.f32.xlu2 %v547_v52 }
 0x205   :  { %v529_v23 = vpop.permute.xlu1 %528 }
 0x206   :  { %v531_v7 = vsub.f32 %v515_v50, %v529_v23 }
 0x208   :  { %v532_v24 = vmul.f32 1.442695, %v531_v7 }
 0x20a   :  { %710 = vpow2.f32 %v532_v24  ;;  %v559_v47 = vpop.xlane.xlu2 %558 }
 0x20b   :  { %vm560_vm13 = vcmp.eq.f32.partialorder %v557_v21, %v559_v47  ;;  %712 = vpow2.f32 %v523_v33  ;;  %v565_v36 = vcvt.f32.s32 %v559_v47 }
 0x20c   :  { %v561_v25 = vsel %vm560_vm13, %v556_v15, inf }
 0x20d   :  { %562 = vmin.xlane.f32.xlu0 %v561_v25  ;;  %v566_v10 = vshll.u32 %v565_v36, 16 }
 0x210   :  { %v711_v29 = vpop.eup %710 }
 0x211   :  { %534 = vadd.xlane.f32.xlu1 %v711_v29  ;;  %v713_v37 = vpop.eup %712 }
 0x212   :  { %v543_v9 = vpop.xlane.xlu2 %542  ;;  %v525_v45 = vmul.f32 %v713_v37, %v521_v17 }
 0x213   :  { %v544_v43 = vadd.f32 %v543_v9, %v540_v30 }
 0x215   :  { %545 = vst.msk [vmem:[#allocation6] sm:$0xff] %vm54_vm0, %v544_v43 }
 0x21a   :  { %v549_v61 = vpop.xlane.xlu2 %548 }
 0x21b   :  { %v550_v20 = vadd.f32 %v549_v61, %v546_v38 }
 0x21c   :  { %v583_v55 = vld [vmem:[#allocation6] sm:$0xff] }
 0x21d   :  { %551 = vst.msk [vmem:[#allocation7] sm:$0xff] %vm54_vm0, %v550_v20 }
 0x224   :  { %v592_v27 = vld [vmem:[#allocation7] sm:$0xff] }
 0x225   :  { %593 = vst.msk [vmem:[%s1208_s6] sm:$0xff] %vm54_vm0, %v592_v27 }
 0x280   :  { %v563_v39 = vpop.xlane.xlu0 %562 }
 0x281   :  { %v564_v41 = vcvt.f32.s32 %v563_v39 }
 0x283   :  { %v567_v44 = vadd.s32 %v566_v10, %v564_v41 }
 0x284   :  { %v535_v46 = vpop.xlane.xlu1 %534 }
 0x285   :  { %v573_v51 = vsel %vm569_vm9, %v567_v44, %v572_v57  ;;  %v536_v34 = vadd.f32 %v535_v46, %v525_v45 }
 0x286   :  { %574 = vst.msk [vmem:[#allocation9] sm:$0xff] %vm54_vm0, %v573_v51 }
 0x287   :  { %538 = vst.msk [vmem:[#allocation5] sm:$0xff] %vm54_vm0, %v536_v34 }
 0x28d   :  { %v586_v48 = vld [vmem:[#allocation9] sm:$0xff] }
 0x28e   :  { %vm588_vm14 = vcmp.eq.s32.totalorder %v586_v48, %v820_v54  ;;  %v579_v26 = vld [vmem:[#allocation5] sm:$0xff] }
 0x28f   :  { %v655_v49 = vsel %vm588_vm14, 1.0, %v773_v5  ;;  %714 = vlog2.f32 %v579_v26 }
 0x290   :  { %591 = vst.msk [vmem:[%s1207_s5] sm:$0xff] %vm54_vm0, %v655_v49 }
 0x295   :  { %v715_v52 = vpop.eup %714 }
 0x296   :  { %v581_v12 = vmul.f32 0.6931472, %v715_v52 }
 0x298   :  { %v582_v40 = vadd.f32 %v581_v12, %v578_v53 }
 0x29a   :  { %v584_v56 = vsub.f32 %v582_v40, %v583_v55 }
 0x29c   :  { %585 = vst.msk [vmem:[%s1206_s4] sm:$0xff] %vm54_vm0, %v584_v56 }
 0x29d   :  { %766 = dma.done.wait [#allocation12], 128  }
 0x29e   :  { %767 = vsyncadd [#allocation12], 4294967168 }
 0x29f   :  { %621 = vsyncpa [#allocation11], 1 }
 0x2a0   :  { %622 = vsyncpa [#allocation12], 1 }

</bundles_post_ra>
